<compile_context>
chip_gen: v7x
topology: tpu7x:2x2x1
jax: 0.10.0
libtpu: 0.0.40
codegen_flags: <defaults>
</compile_context>

<pallas_src>
import math
import functools
import jax
import jax.numpy as jnp
import numpy as np
from jax.experimental import pallas as pl
from jax.experimental.pallas import tpu as pltpu


def _round_up(x, m):
    return ((x + m - 1) // m) * m


def _pick_divisor(dim, candidates):
    for c in candidates:
        if dim % c == 0:
            return c
    return 128  # dim is always a multiple of 128 here


_VMEM_TILE_BUDGET = 32 * 1024 * 1024   # tile working set (fits default scoped VMEM)
_VMEM_LIMIT_BYTES = 48 * 1024 * 1024   # below 64 MiB physical VMEM on v7x


def _choose_tiles(M, Kp, Np, a_bytes, b_bytes, out_bytes):
    """Pick (tm, tk, tn) so 2*(A+B+bias+out tiles) + acc fits the VMEM budget."""
    tn = _pick_divisor(Np, (512, 384, 256, 128))
    tk = _pick_divisor(Kp, (2048, 1536, 1024, 768, 512, 384, 256, 128))
    tm_cap = min(1024, _round_up(M, 128))
    tm = 128
    for cand in (1024, 768, 512, 384, 256, 128):
        if cand > tm_cap:
            continue
        need = (2 * (cand * tk * a_bytes + tk * tn * b_bytes
                     + tn * 4 + cand * tn * out_bytes)
                + cand * tn * 4)
        if need <= _VMEM_TILE_BUDGET:
            tm = cand
            break
    return tm, tk, tn


# ----------------------------------------------------------------------------
# Pallas kernel: grouped, K-tiled matmul + bias.
#   grid = (G, M_tiles, N_tiles, K_tiles), K is the reduction axis (last).
# ----------------------------------------------------------------------------
def _matmul_bias_kernel(a_ref, b_ref, bias_ref, o_ref, acc_ref):
    @pl.when(pl.program_id(3) == 0)
    def _():
        acc_ref[...] = jnp.zeros_like(acc_ref)

    acc_ref[...] += jnp.dot(a_ref[...], b_ref[...],
                            preferred_element_type=jnp.float32)

    @pl.when(pl.program_id(3) == pl.num_programs(3) - 1)
    def _():
        o_ref[...] = (acc_ref[...]
                      + bias_ref[...].astype(jnp.float32)).astype(o_ref.dtype)


def _pallas_grouped_matmul_bias(a, b, bias, out_dtype):
    """a: (G, M, Kp) bf16, b: (G, Kp, Np) bf16, bias: (G, 1, Np) f32."""
    G, M, Kp = a.shape
    _, _, Np = b.shape
    tm, tk, tn = _choose_tiles(M, Kp, Np,
                               a.dtype.itemsize, b.dtype.itemsize,
                               jnp.dtype(out_dtype).itemsize)
    grid = (G, pl.cdiv(M, tm), Np // tn, Kp // tk)
    return pl.pallas_call(
        _matmul_bias_kernel,
        out_shape=jax.ShapeDtypeStruct((G, M, Np), out_dtype),
        grid_spec=pltpu.PrefetchScalarGridSpec(
            num_scalar_prefetch=0,
            grid=grid,
            in_specs=[
                pl.BlockSpec((None, tm, tk), lambda g, i, j, k: (g, i, k)),
                pl.BlockSpec((None, tk, tn), lambda g, i, j, k: (g, k, j)),
                pl.BlockSpec((None, 1, tn), lambda g, i, j, k: (g, 0, j)),
            ],
            out_specs=pl.BlockSpec((None, tm, tn), lambda g, i, j, k: (g, i, j)),
            scratch_shapes=[pltpu.VMEM((tm, tn), jnp.float32)],
        ),
        compiler_params=pltpu.CompilerParams(
            dimension_semantics=("parallel", "parallel", "parallel", "arbitrary"),
            vmem_limit_bytes=_VMEM_LIMIT_BYTES,
        ),
    )(a, b, bias)


# ----------------------------------------------------------------------------
# Quaternion weight construction (Hamilton-product block matrix):
#   [ r -i -j -k ]
#   [ i  r -k  j ]
#   [ j  k  r -i ]
#   [ k -j  i  r ]
# ----------------------------------------------------------------------------
def _construct_matrix(r, i, j, k):
    row0 = jnp.concatenate([r, -i, -j, -k], axis=1)
    row1 = jnp.concatenate([i,  r, -k,  j], axis=1)
    row2 = jnp.concatenate([j,  k,  r, -i], axis=1)
    row3 = jnp.concatenate([k, -j,  i,  r], axis=1)
    return jnp.concatenate([row0, row1, row2, row3], axis=0)


# ----------------------------------------------------------------------------
# Conv2d via channel-last im2col + single grouped Pallas matmul.
# ----------------------------------------------------------------------------
def _qconv2d_forward(x, weight, bias, *, stride, padding, dilation, groups,
                     compute_dtype=jnp.bfloat16):
    N, Cin, H, W = x.shape
    Cout, Cin_g, kh, kw = weight.shape
    sh, sw = stride
    dh, dw = dilation
    (pt, pb), (plf, prt) = padding          # ((top, bottom), (left, right))
    G = groups
    Cout_g = Cout // G

    Ho = (H + pt + pb - dh * (kh - 1) - 1) // sh + 1
    Wo = (W + plf + prt - dw * (kw - 1) - 1) // sw + 1
    M = N * Ho * Wo

    K = Cin_g * kh * kw
    Kp = _round_up(K, 128)                  # lane-dense contraction dim
    Np = _round_up(Cout_g, 128)             # lane-dense output dim

    # NCHW -> NHWC once (channels on the lane axis), zero pad, cast to bf16.
    xp = jnp.pad(x, ((0, 0), (0, 0), (pt, pb), (plf, prt)))
    xp = jnp.transpose(xp, (0, 2, 3, 1)).astype(compute_dtype)   # (N, Hp, Wp, Cin)

    bias_f32 = (bias.astype(jnp.float32) if bias is not None
                else jnp.zeros((Cout,), jnp.float32))

    cols, w_mats, b_rows = [], [], []
    for g in range(G):
        xg = xp[..., g * Cin_g:(g + 1) * Cin_g]
        pieces = []
        for dy in range(kh):
            for dx in range(kw):
                pieces.append(
                    xg[:, dy * dh: dy * dh + (Ho - 1) * sh + 1: sh,
                          dx * dw: dx * dw + (Wo - 1) * sw + 1: sw, :])
        if Kp > K:  # fold the K zero-padding into the same concat (no extra pass)
            pieces.append(jnp.zeros((N, Ho, Wo, Kp - K), compute_dtype))
        cols.append(jnp.concatenate(pieces, axis=-1).reshape(M, Kp))

        # weight (Cout_g, Cin_g, kh, kw) -> (kh, kw, Cin_g, Cout_g) -> (K, Cout_g)
        wg = jnp.transpose(weight[g * Cout_g:(g + 1) * Cout_g],
                           (2, 3, 1, 0)).reshape(K, Cout_g)
        wg = jnp.pad(wg, ((0, Kp - K), (0, Np - Cout_g))).astype(compute_dtype)
        w_mats.append(wg)

        bg = bias_f32[g * Cout_g:(g + 1) * Cout_g]
        b_rows.append(jnp.pad(bg, (0, Np - Cout_g)).reshape(1, Np))

    a = jnp.stack(cols, axis=0)      # (G, M, Kp)  bf16
    b = jnp.stack(w_mats, axis=0)    # (G, Kp, Np) bf16
    bia = jnp.stack(b_rows, axis=0)  # (G, 1, Np)  f32

    out = _pallas_grouped_matmul_bias(a, b, bia, x.dtype)   # (G, M, Np)

    out = out[:, :, :Cout_g].reshape(G, N, Ho, Wo, Cout_g)
    out = jnp.transpose(out, (1, 0, 4, 2, 3)).reshape(N, Cout, Ho, Wo)
    return out


# ----------------------------------------------------------------------------
# QConv2d module (parameters built deterministically in-script)
# ----------------------------------------------------------------------------
class QConv2dPallas:
    def __init__(self, in_channels, out_channels, kernel_size, stride=1,
                 padding=0, dilation=1, groups=1, bias=True, key=None):
        kh, kw = (kernel_size, kernel_size) if isinstance(kernel_size, int) else kernel_size
        self.kernel_size = (kh, kw)
        self.stride = (stride, stride) if isinstance(stride, int) else tuple(stride)
        self.dilation = (dilation, dilation) if isinstance(dilation, int) else tuple(dilation)
        self.groups = groups
        self.in_channels = in_channels
        self.out_channels = out_channels

        assert out_channels % 4 == 0 and (in_channels // groups) % 4 == 0

        # resolve padding (string or int/tuple) -> ((top,bot),(left,right))
        if isinstance(padding, str):
            if padding == "valid":
                self.padding = ((0, 0), (0, 0))
            elif padding == "same":
                assert all(s == 1 for s in self.stride)
                pads = []
                for d, k in zip(self.dilation, self.kernel_size):
                    total = d * (k - 1)
                    pads.append((total // 2, total - total // 2))
                self.padding = tuple(pads)
            else:
                raise ValueError(padding)
        else:
            ph, pw = (padding, padding) if isinstance(padding, int) else padding
            self.padding = ((ph, ph), (pw, pw))

        a, b = out_channels, in_channels // groups
        wshape = (a // 4, b // 4, kh, kw)
        # kaiming_uniform_(a=sqrt(5)) on r_weight shape -> bound = 1/sqrt(fan_in)
        fan_in = (b // 4) * kh * kw
        bound = 1.0 / math.sqrt(fan_in)
        key = jax.random.PRNGKey(0) if key is None else key
        kr, ki, kj, kk, kb = jax.random.split(key, 5)
        self.r_weight = jax.random.uniform(kr, wshape, jnp.float32, -bound, bound)
        self.i_weight = jax.random.uniform(ki, wshape, jnp.float32, -bound, bound)
        self.j_weight = jax.random.uniform(kj, wshape, jnp.float32, -bound, bound)
        self.k_weight = jax.random.uniform(kk, wshape, jnp.float32, -bound, bound)
        self.bias = (jax.random.uniform(kb, (out_channels,), jnp.float32, -bound, bound)
                     if bias else None)

        self._forward = jax.jit(functools.partial(
            _qconv2d_forward, stride=self.stride, padding=self.padding,
            dilation=self.dilation, groups=self.groups))

    def get_weight(self):
        return _construct_matrix(self.r_weight, self.i_weight,
                                 self.j_weight, self.k_weight)

    def __call__(self, x):
        return self._forward(x, self.get_weight(), self.bias)


if __name__ == "__main__":
    key = jax.random.PRNGKey(0)
    kx, kp = jax.random.split(key)

    N, Cin, H, W = 2, 4, 16, 16
    Cout, ksz = 8, 3
    x = jax.random.normal(kx, (N, Cin, H, W), jnp.float32)

    mod = QConv2dPallas(Cin, Cout, ksz, stride=1, padding=1,
                        dilation=1, groups=1, bias=True, key=kp)

    out = jax.block_until_ready(mod(x))
    assert out.shape == (N, Cout, H, W), out.shape

    # Reference: XLA conv on the same bf16-quantized operands (the kernel uses
    # bf16 MXU inputs with f32 accumulation), computed at HIGHEST precision.
    w = mod.get_weight()
    xq = x.astype(jnp.bfloat16).astype(jnp.float32)
    wq = w.astype(jnp.bfloat16).astype(jnp.float32)
    ref = jax.lax.conv_general_dilated(
        xq, wq,
        window_strides=mod.stride,
        padding=mod.padding,
        rhs_dilation=mod.dilation,
        dimension_numbers=("NCHW", "OIHW", "NCHW"),
        feature_group_count=mod.groups,
        precision=jax.lax.Precision.HIGHEST,
    ) + mod.bias.reshape(1, Cout, 1, 1)

    np.testing.assert_allclose(np.asarray(out), np.asarray(ref),
                               rtol=1e-2, atol=1e-2)
    print("KERNEL_OK")
</pallas_src>

<mosaic_0001>
module attributes {stable_mosaic.version = 11 : i64} {
  func.func @_matmul_bias_kernel(%arg0: i32, %arg1: i32, %arg2: i32, %arg3: i32, %arg4: memref<1x512x128xbf16, #tpu.memory_space<vmem>>, %arg5: memref<1x128x128xbf16, #tpu.memory_space<vmem>>, %arg6: memref<1x1x128xf32, #tpu.memory_space<vmem>>, %arg7: memref<1x512x128xf32, #tpu.memory_space<vmem>>, %arg8: memref<512x128xf32, #tpu.memory_space<vmem>>) attributes {dimension_semantics = [#tpu.dimension_semantics<parallel>, #tpu.dimension_semantics<parallel>, #tpu.dimension_semantics<parallel>, #tpu.dimension_semantics<arbitrary>], iteration_bounds = array<i64: 1, 1, 1, 1>, scalar_prefetch = 0 : i64, scratch_operands = 1 : i64, tpu.core_type = #tpu.core_type<tc>, window_params = [{transform_indices = @transform_0, window_bounds = array<i64: 1, 512, 128>}, {transform_indices = @transform_1, window_bounds = array<i64: 1, 128, 128>}, {transform_indices = @transform_2, window_bounds = array<i64: 1, 1, 128>}, {transform_indices = @transform_3, window_bounds = array<i64: 1, 512, 128>}]} {
    %c0_i32 = arith.constant 0 : i32
    %0 = arith.cmpi eq, %arg3, %c0_i32 : i32
    %1 = arith.extui %0 : i1 to i32
    %c0_i32_0 = arith.constant 0 : i32
    %2 = arith.cmpi ne, %1, %c0_i32_0 : i32
    scf.if %2 {
      %cst_12 = arith.constant 0.000000e+00 : f32
      %14 = vector.broadcast %cst_12 : f32 to vector<512x128xf32>
      %c0_13 = arith.constant 0 : index
      %c0_14 = arith.constant 0 : index
      %15 = vector.load %arg8[%c0_13, %c0_14] : memref<512x128xf32, #tpu.memory_space<vmem>>, vector<512x128xf32>
      tpu.vector_store %arg8[%c0_13, %c0_14], %14 {strides = array<i32>} : memref<512x128xf32, #tpu.memory_space<vmem>>, vector<512x128xf32>,
    } else {
    }
    %c0 = arith.constant 0 : index
    %c0_1 = arith.constant 0 : index
    %3 = vector.load %arg8[%c0, %c0_1] : memref<512x128xf32, #tpu.memory_space<vmem>>, vector<512x128xf32>
    %c0_2 = arith.constant 0 : index
    %c0_3 = arith.constant 0 : index
    %c0_4 = arith.constant 0 : index
    %4 = vector.load %arg4[%c0_2, %c0_3, %c0_4] : memref<1x512x128xbf16, #tpu.memory_space<vmem>>, vector<1x512x128xbf16>
    %5 = vector.shape_cast %4 : vector<1x512x128xbf16> to vector<512x128xbf16>
    %c0_5 = arith.constant 0 : index
    %c0_6 = arith.constant 0 : index
    %c0_7 = arith.constant 0 : index
    %6 = vector.load %arg5[%c0_5, %c0_6, %c0_7] : memref<1x128x128xbf16, #tpu.memory_space<vmem>>, vector<1x128x128xbf16>
    %7 = vector.shape_cast %6 : vector<1x128x128xbf16> to vector<128x128xbf16>
    %cst = arith.constant dense<0.000000e+00> : vector<512x128xf32>
    %8 = tpu.matmul %5, %7, %cst {dimension_numbers = #tpu.dot_dimension_numbers<[1], [0], [0], [1], [0, 0, 1, 1], [], []>} : vector<512x128xbf16>, vector<128x128xbf16>, vector<512x128xf32> -> vector<512x128xf32>
    %9 = arith.addf %3, %8 : vector<512x128xf32>
    %c0_8 = arith.constant 0 : index
    %c0_9 = arith.constant 0 : index
    %10 = vector.load %arg8[%c0_8, %c0_9] : memref<512x128xf32, #tpu.memory_space<vmem>>, vector<512x128xf32>
    tpu.vector_store %arg8[%c0_8, %c0_9], %9 {strides = array<i32>} : memref<512x128xf32, #tpu.memory_space<vmem>>, vector<512x128xf32>,
    %c0_i32_10 = arith.constant 0 : i32
    %11 = arith.cmpi eq, %arg3, %c0_i32_10 : i32
    %12 = arith.extui %11 : i1 to i32
    %c0_i32_11 = arith.constant 0 : i32
    %13 = arith.cmpi ne, %12, %c0_i32_11 : i32
    scf.if %13 {
      %c0_12 = arith.constant 0 : index
      %c0_13 = arith.constant 0 : index
      %14 = vector.load %arg8[%c0_12, %c0_13] : memref<512x128xf32, #tpu.memory_space<vmem>>, vector<512x128xf32>
      %c0_14 = arith.constant 0 : index
      %c0_15 = arith.constant 0 : index
      %c0_16 = arith.constant 0 : index
      %15 = vector.load %arg6[%c0_14, %c0_15, %c0_16] : memref<1x1x128xf32, #tpu.memory_space<vmem>>, vector<1x1x128xf32>
      %16 = vector.shape_cast %15 : vector<1x1x128xf32> to vector<1x128xf32>
      %17 = vector.broadcast %16 : vector<1x128xf32> to vector<512x128xf32>
      %18 = arith.addf %14, %17 : vector<512x128xf32>
      %c0_17 = arith.constant 0 : index
      %c0_18 = arith.constant 0 : index
      %c0_19 = arith.constant 0 : index
      %19 = vector.load %arg7[%c0_17, %c0_18, %c0_19] : memref<1x512x128xf32, #tpu.memory_space<vmem>>, vector<1x512x128xf32>
      %20 = vector.shape_cast %19 : vector<1x512x128xf32> to vector<512x128xf32>
      %21 = vector.shape_cast %18 : vector<512x128xf32> to vector<1x512x128xf32>
      tpu.vector_store %arg7[%c0_17, %c0_18, %c0_19], %21 {strides = array<i32>} : memref<1x512x128xf32, #tpu.memory_space<vmem>>, vector<1x512x128xf32>,
    } else {
    }
    return
  }
  func.func @transform_0(%arg0: i32, %arg1: i32, %arg2: i32, %arg3: i32) -> (i32, i32, i32) {
    %c0_i32 = arith.constant 0 : i32
    return %arg0, %arg1, %arg3 : i32, i32, i32
  }
  func.func @transform_1(%arg0: i32, %arg1: i32, %arg2: i32, %arg3: i32) -> (i32, i32, i32) {
    %c0_i32 = arith.constant 0 : i32
    return %arg0, %arg3, %arg2 : i32, i32, i32
  }
  func.func @transform_2(%arg0: i32, %arg1: i32, %arg2: i32, %arg3: i32) -> (i32, i32, i32) {
    %c0_i32 = arith.constant 0 : i32
    %c0_i32_0 = arith.constant 0 : i32
    return %arg0, %c0_i32, %arg2 : i32, i32, i32
  }
  func.func @transform_3(%arg0: i32, %arg1: i32, %arg2: i32, %arg3: i32) -> (i32, i32, i32) {
    %c0_i32 = arith.constant 0 : i32
    return %arg0, %arg1, %arg2 : i32, i32, i32
  }
}

</mosaic_0001>

<bundles_post_ra>
// kernel: _qconv2d_forward.1
= control target key start
LH: loop header
LB: loop body
LE: loop exit
PB: predicated region body
PF: predicated region fallthrough
CT: control target
= control target key end

     0   :  { %s1708_s1 = inlined_call_operand.vmem [shape: bf16[1,128,128], index: 1, kind: input, shape index: {}]   ;;  %s1709_s0 = inlined_call_operand.vmem [shape: bf16[1,512,128], index: 0, kind: input, shape index: {}]   ;;  %s1710_s2 = inlined_call_operand.vmem [shape: f32[1,1,128], index: 2, kind: input, shape index: {}]   ;;  %s1711_s3 = inlined_call_operand.vmem [shape: f32[1,512,128], index: 3, kind: output, shape index: {}]  }
   0x1   :  { %v1267_v0 = vld [vmem:[%s1708_s1] sm:$0xff]   ;;  %v1268_v1 = vld [vmem:[%s1708_s1 + $0x8] sm:$0xff]   ;;  %v1269_v2 = vld [vmem:[%s1708_s1 + $0x10] sm:$0xff]  }
   0x2   :  { %1171 = vmatprep.subr.bf16.mxu0 %v1267_v0  ;;  %1251 = vmatprep.subr.bf16.mxu1 %v1267_v0  ;;  %v1270_v3 = vld [vmem:[%s1708_s1 + $0x18] sm:$0xff]   ;;  %v1275_v4 = vld [vmem:[%s1709_s0] sm:$0xff]   ;;  %v1272_v7 = vld [vmem:[%s1708_s1 + $0x28] sm:$0xff]  }
   0x3   :  { %1172 = vmatpush3.bf16.msra.mxu0 %v1267_v0  ;;  %1259 = vmatpush3.bf16.msra.mxu1 %v1267_v0  ;;  %v1276_v5 = vld [vmem:[%s1709_s0 + $0x80] sm:$0xff]   ;;  %v1273_v8 = vld [vmem:[%s1708_s1 + $0x30] sm:$0xff]   ;;  %v1274_v9 = vld [vmem:[%s1708_s1 + $0x38] sm:$0xff]  }
   0x4   :  { %1173 = vmatprep.subr.bf16.mxu0 %v1268_v1  ;;  %1252 = vmatprep.subr.bf16.mxu1 %v1268_v1  ;;  %v1271_v6 = vld [vmem:[%s1708_s1 + $0x20] sm:$0xff]   ;;  %v1277_v10 = vld [vmem:[%s1709_s0 + $0x8] sm:$0xff]   ;;  %v1279_v12 = vld [vmem:[%s1709_s0 + $0x10] sm:$0xff]  }
   0x5   :  { %1187 = vmatprep.mubr.bf16.mxu0 %v1275_v4  ;;  %1219 = vmatprep.mubr.bf16.mxu1 %v1276_v5  ;;  %v1278_v11 = vld [vmem:[%s1709_s0 + $0x88] sm:$0xff]   ;;  %v1280_v13 = vld [vmem:[%s1709_s0 + $0x90] sm:$0xff]   ;;  %v1281_v14 = vld [vmem:[%s1709_s0 + $0x18] sm:$0xff]  }
   0x6   :  { %v1282_v15 = vld [vmem:[%s1709_s0 + $0x98] sm:$0xff]   ;;  %v1283_v16 = vld [vmem:[%s1709_s0 + $0x20] sm:$0xff]   ;;  %v1285_v18 = vld [vmem:[%s1709_s0 + $0x28] sm:$0xff]  }
   0x7   :  { %1174 = vmatpush3.bf16.msra.mxu0 %v1268_v1  ;;  %1260 = vmatpush3.bf16.msra.mxu1 %v1268_v1  ;;  %v1284_v17 = vld [vmem:[%s1709_s0 + $0xa0] sm:$0xff]   ;;  %v1286_v19 = vld [vmem:[%s1709_s0 + $0xa8] sm:$0xff]   ;;  %v1287_v20 = vld [vmem:[%s1709_s0 + $0x30] sm:$0xff]  }
   0x8   :  { %1175 = vmatprep.subr.bf16.mxu0 %v1269_v2  ;;  %1253 = vmatprep.subr.bf16.mxu1 %v1269_v2  ;;  %v1288_v21 = vld [vmem:[%s1709_s0 + $0xb0] sm:$0xff]   ;;  %v1289_v22 = vld [vmem:[%s1709_s0 + $0x38] sm:$0xff]   ;;  %v1291_v24 = vld [vmem:[%s1709_s0 + $0x40] sm:$0xff]  }
   0x9   :  { %v1290_v23 = vld [vmem:[%s1709_s0 + $0xb8] sm:$0xff]   ;;  %v1292_v25 = vld [vmem:[%s1709_s0 + $0xc0] sm:$0xff]   ;;  %v1293_v26 = vld [vmem:[%s1709_s0 + $0x48] sm:$0xff]  }
   0xa   :  { %v1294_v27 = vld [vmem:[%s1709_s0 + $0xc8] sm:$0xff]   ;;  %v1295_v28 = vld [vmem:[%s1709_s0 + $0x50] sm:$0xff]   ;;  %v1297_v30 = vld [vmem:[%s1709_s0 + $0x58] sm:$0xff]  }
   0xb   :  { %1176 = vmatpush3.bf16.msra.mxu0 %v1269_v2  ;;  %1261 = vmatpush3.bf16.msra.mxu1 %v1269_v2  ;;  %v1296_v29 = vld [vmem:[%s1709_s0 + $0xd0] sm:$0xff]   ;;  %v1298_v31 = vld [vmem:[%s1709_s0 + $0xd8] sm:$0xff]   ;;  %v1299_v32 = vld [vmem:[%s1709_s0 + $0x60] sm:$0xff]  }
   0xc   :  { %1177 = vmatprep.subr.bf16.mxu0 %v1270_v3  ;;  %1254 = vmatprep.subr.bf16.mxu1 %v1270_v3  ;;  %v1300_v33 = vld [vmem:[%s1709_s0 + $0xe0] sm:$0xff]   ;;  %v1301_v34 = vld [vmem:[%s1709_s0 + $0x68] sm:$0xff]   ;;  %v1303_v36 = vld [vmem:[%s1709_s0 + $0x70] sm:$0xff]  }
   0xd   :  { %v1302_v35 = vld [vmem:[%s1709_s0 + $0xe8] sm:$0xff]   ;;  %v1304_v37 = vld [vmem:[%s1709_s0 + $0xf0] sm:$0xff]   ;;  %v1305_v38 = vld [vmem:[%s1709_s0 + $0x78] sm:$0xff]  }
   0xe   :  { %v1306_v39 = vld [vmem:[%s1709_s0 + $0xf8] sm:$0xff]   ;;  %v1450_v40 = vld [vmem:[%s1710_s2] ss:$0 sm:$0xff] }
   0xf   :  { %1178 = vmatpush3.bf16.msra.mxu0 %v1270_v3  ;;  %1262 = vmatpush3.bf16.msra.mxu1 %v1270_v3 }
  0x10   :  { %1179 = vmatprep.subr.bf16.mxu0 %v1271_v6  ;;  %1255 = vmatprep.subr.bf16.mxu1 %v1271_v6 }
  0x13   :  { %1180 = vmatpush3.bf16.msra.mxu0 %v1271_v6  ;;  %1263 = vmatpush3.bf16.msra.mxu1 %v1271_v6 }
  0x14   :  { %1181 = vmatprep.subr.bf16.mxu0 %v1272_v7  ;;  %1256 = vmatprep.subr.bf16.mxu1 %v1272_v7 }
  0x17   :  { %1182 = vmatpush3.bf16.msra.mxu0 %v1272_v7  ;;  %1264 = vmatpush3.bf16.msra.mxu1 %v1272_v7 }
  0x18   :  { %1183 = vmatprep.subr.bf16.mxu0 %v1273_v8  ;;  %1257 = vmatprep.subr.bf16.mxu1 %v1273_v8 }
  0x1b   :  { %1184 = vmatpush3.bf16.msra.mxu0 %v1273_v8  ;;  %1265 = vmatpush3.bf16.msra.mxu1 %v1273_v8 }
  0x1c   :  { %1185 = vmatprep.subr.bf16.mxu0 %v1274_v9  ;;  %1258 = vmatprep.subr.bf16.mxu1 %v1274_v9 }
  0x1f   :  { %1186 = vmatpush3.bf16.msra.mxu0 %v1274_v9  ;;  %1266 = vmatpush3.bf16.msra.mxu1 %v1274_v9 }
  0x22   :  { %1188 = vmatmul.mubr.bf16.vlgmr.msra.gmra.mrb[0].mxu0 %v1277_v10  ;;  %1220 = vmatmul.mubr.bf16.vlgmr.msra.gmra.mrb[0].mxu1 %v1278_v11 }
  0x23   :  { %1191 = vmatprep.mubr.bf16.mxu0 %v1279_v12  ;;  %1223 = vmatprep.mubr.bf16.mxu1 %v1280_v13 }
  0x2a   :  { %1192 = vmatmul.mubr.bf16.gmra.mrb[4].mxu0 %v1281_v14  ;;  %1224 = vmatmul.mubr.bf16.gmra.mrb[4].mxu1 %v1282_v15 }
  0x2b   :  { %1195 = vmatprep.mubr.bf16.mxu0 %v1283_v16  ;;  %1227 = vmatprep.mubr.bf16.mxu1 %v1284_v17 }
  0x32   :  { %1196 = vmatmul.mubr.bf16.gmra.mrb[8].mxu0 %v1285_v18  ;;  %1228 = vmatmul.mubr.bf16.gmra.mrb[8].mxu1 %v1286_v19 }
  0x33   :  { %1199 = vmatprep.mubr.bf16.mxu0 %v1287_v20  ;;  %1231 = vmatprep.mubr.bf16.mxu1 %v1288_v21 }
  0x3a   :  { %1200 = vmatmul.mubr.bf16.gmra.mrb[12].mxu0 %v1289_v22  ;;  %1232 = vmatmul.mubr.bf16.gmra.mrb[12].mxu1 %v1290_v23 }
  0x3b   :  { %1203 = vmatprep.mubr.bf16.mxu0 %v1291_v24  ;;  %1235 = vmatprep.mubr.bf16.mxu1 %v1292_v25 }
  0x42   :  { %1204 = vmatmul.mubr.bf16.gmra.mrb[16].mxu0 %v1293_v26  ;;  %1236 = vmatmul.mubr.bf16.gmra.mrb[16].mxu1 %v1294_v27 }
  0x43   :  { %1207 = vmatprep.mubr.bf16.mxu0 %v1295_v28  ;;  %1239 = vmatprep.mubr.bf16.mxu1 %v1296_v29 }
  0x4a   :  { %1208 = vmatmul.mubr.bf16.gmra.mrb[20].mxu0 %v1297_v30  ;;  %1240 = vmatmul.mubr.bf16.gmra.mrb[20].mxu1 %v1298_v31 }
  0x4b   :  { %1211 = vmatprep.mubr.bf16.mxu0 %v1299_v32  ;;  %1243 = vmatprep.mubr.bf16.mxu1 %v1300_v33 }
  0x52   :  { %1212 = vmatmul.mubr.bf16.gmra.mrb[24].mxu0 %v1301_v34  ;;  %1244 = vmatmul.mubr.bf16.gmra.mrb[24].mxu1 %v1302_v35 }
  0x53   :  { %1215 = vmatprep.mubr.bf16.mxu0 %v1303_v36  ;;  %1247 = vmatprep.mubr.bf16.mxu1 %v1304_v37 }
  0x5a   :  { %1216 = vmatmul.mubr.bf16.gmra.mrb[28].mxu0 %v1305_v38  ;;  %1248 = vmatmul.mubr.bf16.gmra.mrb[28].mxu1 %v1306_v39 }
  0xf5   :  { %v1189_v41 = vpop.f32.mrb[0].mxu0  ;;  %v1221_v42 = vpop.f32.mrb[0].mxu1 }
  0xf6   :  { %v960_v43 = vadd.f32 %v1189_v41, %v1450_v40  ;;  %v992_v44 = vadd.f32 %v1221_v42, %v1450_v40  ;;  %v501_v45 = vpop.f32.mrb[1].mxu0  ;;  %v629_v46 = vpop.f32.mrb[1].mxu1 }
  0xf7   :  { %v958_v47 = vadd.f32 %v1450_v40, %v501_v45  ;;  %v990_v48 = vadd.f32 %v1450_v40, %v629_v46  ;;  %v1190_v49 = vpop.f32.mrb[2].mxu0  ;;  %v1222_v50 = vpop.f32.mrb[2].mxu1 }
  0xf8   :  { %1024 = vst [vmem:[%s1711_s3 + $0x10] sm:$0xff] %v960_v43  ;;  %1056 = vst [vmem:[%s1711_s3 + $0x110] sm:$0xff] %v992_v44  ;;  %v961_v51 = vadd.f32 %v1190_v49, %v1450_v40  ;;  %v993_v52 = vadd.f32 %v1222_v50, %v1450_v40  ;;  %v504_v53 = vpop.f32.mrb[3].mxu0  ;;  %v632_v54 = vpop.f32.mrb[3].mxu1 }
  0xf9   :  { %1022 = vst [vmem:[%s1711_s3] sm:$0xff] %v958_v47  ;;  %1054 = vst [vmem:[%s1711_s3 + $0x100] sm:$0xff] %v990_v48  ;;  %v959_v55 = vadd.f32 %v1450_v40, %v504_v53  ;;  %v991_v56 = vadd.f32 %v1450_v40, %v632_v54 }
  0xfa   :  { %1025 = vst [vmem:[%s1711_s3 + $0x18] sm:$0xff] %v961_v51  ;;  %1057 = vst [vmem:[%s1711_s3 + $0x118] sm:$0xff] %v993_v52 }
  0xfb   :  { %1023 = vst [vmem:[%s1711_s3 + $0x8] sm:$0xff] %v959_v55  ;;  %1055 = vst [vmem:[%s1711_s3 + $0x108] sm:$0xff] %v991_v56 }
  0xfd   :  { %v1193_v57 = vpop.f32.mrb[4].mxu0  ;;  %v1225_v58 = vpop.f32.mrb[4].mxu1 }
  0xfe   :  { %v964_v59 = vadd.f32 %v1193_v57, %v1450_v40  ;;  %v996_v60 = vadd.f32 %v1225_v58, %v1450_v40  ;;  %v517_v61 = vpop.f32.mrb[5].mxu0  ;;  %v645_v62 = vpop.f32.mrb[5].mxu1 }
  0xff   :  { %v962_v63 = vadd.f32 %v1450_v40, %v517_v61  ;;  %v994_v0 = vadd.f32 %v1450_v40, %v645_v62  ;;  %v1194_v1 = vpop.f32.mrb[6].mxu0  ;;  %v1226_v2 = vpop.f32.mrb[6].mxu1 }
 0x100   :  { %1028 = vst [vmem:[%s1711_s3 + $0x30] sm:$0xff] %v964_v59  ;;  %1060 = vst [vmem:[%s1711_s3 + $0x130] sm:$0xff] %v996_v60  ;;  %v965_v3 = vadd.f32 %v1194_v1, %v1450_v40  ;;  %v997_v4 = vadd.f32 %v1226_v2, %v1450_v40  ;;  %v520_v5 = vpop.f32.mrb[7].mxu0  ;;  %v648_v6 = vpop.f32.mrb[7].mxu1 }
 0x101   :  { %1026 = vst [vmem:[%s1711_s3 + $0x20] sm:$0xff] %v962_v63  ;;  %1058 = vst [vmem:[%s1711_s3 + $0x120] sm:$0xff] %v994_v0  ;;  %v963_v7 = vadd.f32 %v1450_v40, %v520_v5  ;;  %v995_v8 = vadd.f32 %v1450_v40, %v648_v6 }
 0x102   :  { %1029 = vst [vmem:[%s1711_s3 + $0x38] sm:$0xff] %v965_v3  ;;  %1061 = vst [vmem:[%s1711_s3 + $0x138] sm:$0xff] %v997_v4 }
 0x103   :  { %1027 = vst [vmem:[%s1711_s3 + $0x28] sm:$0xff] %v963_v7  ;;  %1059 = vst [vmem:[%s1711_s3 + $0x128] sm:$0xff] %v995_v8 }
 0x105   :  { %v1197_v9 = vpop.f32.mrb[8].mxu0  ;;  %v1229_v10 = vpop.f32.mrb[8].mxu1 }
 0x106   :  { %v968_v11 = vadd.f32 %v1197_v9, %v1450_v40  ;;  %v1000_v12 = vadd.f32 %v1229_v10, %v1450_v40  ;;  %v533_v13 = vpop.f32.mrb[9].mxu0  ;;  %v661_v14 = vpop.f32.mrb[9].mxu1 }
 0x107   :  { %v966_v15 = vadd.f32 %v1450_v40, %v533_v13  ;;  %v998_v16 = vadd.f32 %v1450_v40, %v661_v14  ;;  %v1198_v17 = vpop.f32.mrb[10].mxu0  ;;  %v1230_v18 = vpop.f32.mrb[10].mxu1 }
 0x108   :  { %1032 = vst [vmem:[%s1711_s3 + $0x50] sm:$0xff] %v968_v11  ;;  %1064 = vst [vmem:[%s1711_s3 + $0x150] sm:$0xff] %v1000_v12  ;;  %v969_v19 = vadd.f32 %v1198_v17, %v1450_v40  ;;  %v1001_v20 = vadd.f32 %v1230_v18, %v1450_v40  ;;  %v536_v21 = vpop.f32.mrb[11].mxu0  ;;  %v664_v22 = vpop.f32.mrb[11].mxu1 }
 0x109   :  { %1030 = vst [vmem:[%s1711_s3 + $0x40] sm:$0xff] %v966_v15  ;;  %1062 = vst [vmem:[%s1711_s3 + $0x140] sm:$0xff] %v998_v16  ;;  %v967_v23 = vadd.f32 %v1450_v40, %v536_v21  ;;  %v999_v24 = vadd.f32 %v1450_v40, %v664_v22 }
 0x10a   :  { %1033 = vst [vmem:[%s1711_s3 + $0x58] sm:$0xff] %v969_v19  ;;  %1065 = vst [vmem:[%s1711_s3 + $0x158] sm:$0xff] %v1001_v20 }
 0x10b   :  { %1031 = vst [vmem:[%s1711_s3 + $0x48] sm:$0xff] %v967_v23  ;;  %1063 = vst [vmem:[%s1711_s3 + $0x148] sm:$0xff] %v999_v24 }
 0x10d   :  { %v1201_v25 = vpop.f32.mrb[12].mxu0  ;;  %v1233_v26 = vpop.f32.mrb[12].mxu1 }
 0x10e   :  { %v972_v27 = vadd.f32 %v1201_v25, %v1450_v40  ;;  %v1004_v28 = vadd.f32 %v1233_v26, %v1450_v40  ;;  %v549_v29 = vpop.f32.mrb[13].mxu0  ;;  %v677_v30 = vpop.f32.mrb[13].mxu1 }
 0x10f   :  { %v970_v31 = vadd.f32 %v1450_v40, %v549_v29  ;;  %v1002_v32 = vadd.f32 %v1450_v40, %v677_v30  ;;  %v1202_v33 = vpop.f32.mrb[14].mxu0  ;;  %v1234_v34 = vpop.f32.mrb[14].mxu1 }
 0x110   :  { %1036 = vst [vmem:[%s1711_s3 + $0x70] sm:$0xff] %v972_v27  ;;  %1068 = vst [vmem:[%s1711_s3 + $0x170] sm:$0xff] %v1004_v28  ;;  %v973_v35 = vadd.f32 %v1202_v33, %v1450_v40  ;;  %v1005_v36 = vadd.f32 %v1234_v34, %v1450_v40  ;;  %v552_v37 = vpop.f32.mrb[15].mxu0  ;;  %v680_v38 = vpop.f32.mrb[15].mxu1 }
 0x111   :  { %1034 = vst [vmem:[%s1711_s3 + $0x60] sm:$0xff] %v970_v31  ;;  %1066 = vst [vmem:[%s1711_s3 + $0x160] sm:$0xff] %v1002_v32  ;;  %v971_v39 = vadd.f32 %v1450_v40, %v552_v37  ;;  %v1003_v41 = vadd.f32 %v1450_v40, %v680_v38 }
 0x112   :  { %1037 = vst [vmem:[%s1711_s3 + $0x78] sm:$0xff] %v973_v35  ;;  %1069 = vst [vmem:[%s1711_s3 + $0x178] sm:$0xff] %v1005_v36 }
 0x113   :  { %1035 = vst [vmem:[%s1711_s3 + $0x68] sm:$0xff] %v971_v39  ;;  %1067 = vst [vmem:[%s1711_s3 + $0x168] sm:$0xff] %v1003_v41 }
 0x115   :  { %v1205_v42 = vpop.f32.mrb[16].mxu0  ;;  %v1237_v43 = vpop.f32.mrb[16].mxu1 }
 0x116   :  { %v976_v44 = vadd.f32 %v1205_v42, %v1450_v40  ;;  %v1008_v45 = vadd.f32 %v1237_v43, %v1450_v40  ;;  %v565_v46 = vpop.f32.mrb[17].mxu0  ;;  %v693_v47 = vpop.f32.mrb[17].mxu1 }
 0x117   :  { %v974_v48 = vadd.f32 %v1450_v40, %v565_v46  ;;  %v1006_v49 = vadd.f32 %v1450_v40, %v693_v47  ;;  %v1206_v50 = vpop.f32.mrb[18].mxu0  ;;  %v1238_v51 = vpop.f32.mrb[18].mxu1 }
 0x118   :  { %1040 = vst [vmem:[%s1711_s3 + $0x90] sm:$0xff] %v976_v44  ;;  %1072 = vst [vmem:[%s1711_s3 + $0x190] sm:$0xff] %v1008_v45  ;;  %v977_v52 = vadd.f32 %v1206_v50, %v1450_v40  ;;  %v1009_v53 = vadd.f32 %v1238_v51, %v1450_v40  ;;  %v568_v54 = vpop.f32.mrb[19].mxu0  ;;  %v696_v55 = vpop.f32.mrb[19].mxu1 }
 0x119   :  { %1038 = vst [vmem:[%s1711_s3 + $0x80] sm:$0xff] %v974_v48  ;;  %1070 = vst [vmem:[%s1711_s3 + $0x180] sm:$0xff] %v1006_v49  ;;  %v975_v56 = vadd.f32 %v1450_v40, %v568_v54  ;;  %v1007_v57 = vadd.f32 %v1450_v40, %v696_v55 }
 0x11a   :  { %1041 = vst [vmem:[%s1711_s3 + $0x98] sm:$0xff] %v977_v52  ;;  %1073 = vst [vmem:[%s1711_s3 + $0x198] sm:$0xff] %v1009_v53 }
 0x11b   :  { %1039 = vst [vmem:[%s1711_s3 + $0x88] sm:$0xff] %v975_v56  ;;  %1071 = vst [vmem:[%s1711_s3 + $0x188] sm:$0xff] %v1007_v57 }
 0x11d   :  { %v1209_v58 = vpop.f32.mrb[20].mxu0  ;;  %v1241_v59 = vpop.f32.mrb[20].mxu1 }
 0x11e   :  { %v980_v60 = vadd.f32 %v1209_v58, %v1450_v40  ;;  %v1012_v61 = vadd.f32 %v1241_v59, %v1450_v40  ;;  %v581_v62 = vpop.f32.mrb[21].mxu0  ;;  %v709_v63 = vpop.f32.mrb[21].mxu1 }
 0x11f   :  { %v978_v0 = vadd.f32 %v1450_v40, %v581_v62  ;;  %v1010_v1 = vadd.f32 %v1450_v40, %v709_v63  ;;  %v1210_v2 = vpop.f32.mrb[22].mxu0  ;;  %v1242_v3 = vpop.f32.mrb[22].mxu1 }
 0x120   :  { %1044 = vst [vmem:[%s1711_s3 + $0xb0] sm:$0xff] %v980_v60  ;;  %1076 = vst [vmem:[%s1711_s3 + $0x1b0] sm:$0xff] %v1012_v61  ;;  %v981_v4 = vadd.f32 %v1210_v2, %v1450_v40  ;;  %v1013_v5 = vadd.f32 %v1242_v3, %v1450_v40  ;;  %v584_v6 = vpop.f32.mrb[23].mxu0  ;;  %v712_v7 = vpop.f32.mrb[23].mxu1 }
 0x121   :  { %1042 = vst [vmem:[%s1711_s3 + $0xa0] sm:$0xff] %v978_v0  ;;  %1074 = vst [vmem:[%s1711_s3 + $0x1a0] sm:$0xff] %v1010_v1  ;;  %v979_v8 = vadd.f32 %v1450_v40, %v584_v6  ;;  %v1011_v9 = vadd.f32 %v1450_v40, %v712_v7 }
 0x122   :  { %1045 = vst [vmem:[%s1711_s3 + $0xb8] sm:$0xff] %v981_v4  ;;  %1077 = vst [vmem:[%s1711_s3 + $0x1b8] sm:$0xff] %v1013_v5 }
 0x123   :  { %1043 = vst [vmem:[%s1711_s3 + $0xa8] sm:$0xff] %v979_v8  ;;  %1075 = vst [vmem:[%s1711_s3 + $0x1a8] sm:$0xff] %v1011_v9 }
 0x125   :  { %v1213_v10 = vpop.f32.mrb[24].mxu0  ;;  %v1245_v11 = vpop.f32.mrb[24].mxu1 }
 0x126   :  { %v984_v12 = vadd.f32 %v1213_v10, %v1450_v40  ;;  %v1016_v13 = vadd.f32 %v1245_v11, %v1450_v40  ;;  %v597_v14 = vpop.f32.mrb[25].mxu0  ;;  %v725_v15 = vpop.f32.mrb[25].mxu1 }
 0x127   :  { %v982_v16 = vadd.f32 %v1450_v40, %v597_v14  ;;  %v1014_v17 = vadd.f32 %v1450_v40, %v725_v15  ;;  %v1214_v18 = vpop.f32.mrb[26].mxu0  ;;  %v1246_v19 = vpop.f32.mrb[26].mxu1 }
 0x128   :  { %1048 = vst [vmem:[%s1711_s3 + $0xd0] sm:$0xff] %v984_v12  ;;  %1080 = vst [vmem:[%s1711_s3 + $0x1d0] sm:$0xff] %v1016_v13  ;;  %v985_v20 = vadd.f32 %v1214_v18, %v1450_v40  ;;  %v1017_v21 = vadd.f32 %v1246_v19, %v1450_v40  ;;  %v600_v22 = vpop.f32.mrb[27].mxu0  ;;  %v728_v23 = vpop.f32.mrb[27].mxu1 }
 0x129   :  { %1046 = vst [vmem:[%s1711_s3 + $0xc0] sm:$0xff] %v982_v16  ;;  %1078 = vst [vmem:[%s1711_s3 + $0x1c0] sm:$0xff] %v1014_v17  ;;  %v983_v24 = vadd.f32 %v1450_v40, %v600_v22  ;;  %v1015_v25 = vadd.f32 %v1450_v40, %v728_v23 }
 0x12a   :  { %1049 = vst [vmem:[%s1711_s3 + $0xd8] sm:$0xff] %v985_v20  ;;  %1081 = vst [vmem:[%s1711_s3 + $0x1d8] sm:$0xff] %v1017_v21 }
 0x12b   :  { %1047 = vst [vmem:[%s1711_s3 + $0xc8] sm:$0xff] %v983_v24  ;;  %1079 = vst [vmem:[%s1711_s3 + $0x1c8] sm:$0xff] %v1015_v25 }
 0x12d   :  { %v1217_v26 = vpop.f32.mrb[28].mxu0  ;;  %v1249_v27 = vpop.f32.mrb[28].mxu1 }
 0x12e   :  { %v988_v28 = vadd.f32 %v1217_v26, %v1450_v40  ;;  %v1020_v29 = vadd.f32 %v1249_v27, %v1450_v40  ;;  %v613_v30 = vpop.f32.mrb[29].mxu0  ;;  %v741_v31 = vpop.f32.mrb[29].mxu1 }
 0x12f   :  { %v986_v32 = vadd.f32 %v1450_v40, %v613_v30  ;;  %v1018_v33 = vadd.f32 %v1450_v40, %v741_v31  ;;  %v1218_v34 = vpop.f32.mrb[30].mxu0  ;;  %v1250_v35 = vpop.f32.mrb[30].mxu1 }
 0x130   :  { %1052 = vst [vmem:[%s1711_s3 + $0xf0] sm:$0xff] %v988_v28  ;;  %1084 = vst [vmem:[%s1711_s3 + $0x1f0] sm:$0xff] %v1020_v29  ;;  %v989_v36 = vadd.f32 %v1218_v34, %v1450_v40  ;;  %v1021_v37 = vadd.f32 %v1250_v35, %v1450_v40  ;;  %v616_v38 = vpop.f32.mrb[31].mxu0  ;;  %v744_v39 = vpop.f32.mrb[31].mxu1 }
 0x131   :  { %1050 = vst [vmem:[%s1711_s3 + $0xe0] sm:$0xff] %v986_v32  ;;  %1082 = vst [vmem:[%s1711_s3 + $0x1e0] sm:$0xff] %v1018_v33  ;;  %v987_v41 = vadd.f32 %v1450_v40, %v616_v38  ;;  %v1019_v42 = vadd.f32 %v1450_v40, %v744_v39 }
 0x132   :  { %1053 = vst [vmem:[%s1711_s3 + $0xf8] sm:$0xff] %v989_v36  ;;  %1085 = vst [vmem:[%s1711_s3 + $0x1f8] sm:$0xff] %v1021_v37 }
 0x133   :  { %1051 = vst [vmem:[%s1711_s3 + $0xe8] sm:$0xff] %v987_v41  ;;  %1083 = vst [vmem:[%s1711_s3 + $0x1e8] sm:$0xff] %v1019_v42 }

</bundles_post_ra>
